<compile_context>
chip_gen: v7x
topology: tpu7x:2x2x1
jax: 0.10.0
libtpu: 0.0.40
codegen_flags: <defaults>
</compile_context>

<pallas_src>
import functools

import jax
import jax.numpy as jnp
from jax.experimental import pallas as pl
from jax.experimental.pallas import tpu as pltpu


# ----------------------------------------------------------------------------
# Activation helper (used inside the kernel trace and in the reference)
# ----------------------------------------------------------------------------
def _apply_act(y, act):
    if act is None:
        return y
    if act == "silu":
        return y * jax.nn.sigmoid(y)
    if act == "relu":
        return jnp.maximum(y, 0.0)
    if act == "gelu":
        return jax.nn.gelu(y)
    if act == "mish":
        return y * jnp.tanh(jax.nn.softplus(y))
    raise ValueError(f"unsupported activation: {act}")


def _round_up(a, m):
    return (a + m - 1) // m * m


# ----------------------------------------------------------------------------
# Fused kernel:  o = post_act( act( (x [+ c @ Wc]) @ W1 + b1 ) @ W2 + b2 )
# All weights are pre-transposed (Din, Dout); everything stays in VMEM.
# ----------------------------------------------------------------------------
def _make_fused_kernel(has_cond, has_bias, act_fn, post_act_fn):
    def kernel(*refs):
        it = iter(refs)
        x_ref = next(it)
        c_ref = next(it) if has_cond else None
        cw_ref = next(it) if has_cond else None
        w1_ref = next(it)
        b1_ref = next(it) if has_bias else None
        w2_ref = next(it)
        b2_ref = next(it) if has_bias else None
        o_ref = next(it)

        x = x_ref[...].astype(jnp.float32)
        if has_cond:
            x = x + jnp.dot(c_ref[...], cw_ref[...],
                            preferred_element_type=jnp.float32)

        # linear_1 + bias + activation (intermediate never leaves VMEM)
        h = jnp.dot(x.astype(w1_ref.dtype), w1_ref[...],
                    preferred_element_type=jnp.float32)
        if has_bias:
            h = h + b1_ref[...].astype(jnp.float32)
        h = _apply_act(h, act_fn)

        # linear_2 + bias + optional post activation
        y = jnp.dot(h.astype(w2_ref.dtype), w2_ref[...],
                    preferred_element_type=jnp.float32)
        if has_bias:
            y = y + b2_ref[...].astype(jnp.float32)
        y = _apply_act(y, post_act_fn)

        o_ref[...] = y.astype(o_ref.dtype)

    return kernel


# ----------------------------------------------------------------------------
# Wrapper: builds specs, pads the batch to a multiple of 8, launches one call.
# ----------------------------------------------------------------------------
def timestep_embedding_forward(params, sample, condition=None, *,
                               act_fn="silu", post_act_fn=None, block_m=256):
    """sample: (B, in_channels) -> (B, out_dim). Weights stored pre-transposed."""
    orig_B, c_in = sample.shape
    w1 = params["linear_1_w"]          # (Cin, D)
    w2 = params["linear_2_w"]          # (D, Dout)
    b1 = params.get("linear_1_b")      # (D,)    or None
    b2 = params.get("linear_2_b")      # (Dout,) or None
    has_bias = b1 is not None
    has_cond = condition is not None
    d_mid = w1.shape[1]
    d_out = w2.shape[1]

    # Pad batch (sublane dim) to a multiple of 8 so the MXU never gets 2-row
    # tiles; padded rows are sliced off at the end.
    tm = min(block_m, _round_up(orig_B, 8))
    b_pad = _round_up(orig_B, tm)
    if b_pad != orig_B:
        sample = jnp.pad(sample, ((0, b_pad - orig_B), (0, 0)))
        if has_cond:
            condition = jnp.pad(condition, ((0, b_pad - orig_B), (0, 0)))
    grid = (b_pad // tm,)

    # TODO(synk): for very large time_embed_dim/out_dim the full weights may not
    # fit VMEM; this wrapper assumes TimestepEmbedding-scale weights (<~8 MiB).

    args = [sample]
    in_specs = [pl.BlockSpec((tm, c_in), lambda i: (i, 0))]
    flops = 2 * b_pad * c_in * d_mid + 2 * b_pad * d_mid * d_out
    bytes_accessed = (b_pad * c_in + c_in * d_mid + d_mid * d_out + b_pad * d_out) * 4

    if has_cond:
        cw = params["cond_proj_w"]     # (Ccond, Cin), pre-transposed, bias-free
        c_cond = cw.shape[0]
        args += [condition, cw]
        in_specs += [pl.BlockSpec((tm, c_cond), lambda i: (i, 0)),
                     pl.BlockSpec((c_cond, c_in), lambda i: (0, 0))]
        flops += 2 * b_pad * c_cond * c_in
        bytes_accessed += (b_pad * c_cond + c_cond * c_in) * 4

    args += [w1]
    in_specs += [pl.BlockSpec((c_in, d_mid), lambda i: (0, 0))]
    if has_bias:
        args += [b1.reshape(1, d_mid)]
        in_specs += [pl.BlockSpec((1, d_mid), lambda i: (0, 0))]
        bytes_accessed += d_mid * 4
    args += [w2]
    in_specs += [pl.BlockSpec((d_mid, d_out), lambda i: (0, 0))]
    if has_bias:
        args += [b2.reshape(1, d_out)]
        in_specs += [pl.BlockSpec((1, d_out), lambda i: (0, 0))]
        bytes_accessed += d_out * 4

    kernel = _make_fused_kernel(has_cond, has_bias, act_fn, post_act_fn)

    n_trans = 0
    if act_fn in ("silu", "gelu", "mish"):
        n_trans += b_pad * d_mid
    if post_act_fn in ("silu", "gelu", "mish"):
        n_trans += b_pad * d_out
    cost = pl.CostEstimate(flops=flops, transcendentals=n_trans,
                           bytes_accessed=bytes_accessed)

    out = pl.pallas_call(
        kernel,
        out_shape=jax.ShapeDtypeStruct((b_pad, d_out), sample.dtype),
        grid_spec=pltpu.PrefetchScalarGridSpec(
            num_scalar_prefetch=0,
            grid=grid,
            in_specs=in_specs,
            out_specs=pl.BlockSpec((tm, d_out), lambda i: (i, 0)),
        ),
        compiler_params=pltpu.CompilerParams(
            dimension_semantics=("parallel",),
        ),
        cost_estimate=cost,
    )(*args)

    return out[:orig_B] if b_pad != orig_B else out


# ----------------------------------------------------------------------------
# Parameters (weights stored pre-transposed: (Din, Dout)) + jnp reference
# ----------------------------------------------------------------------------
def init_params(key, in_channels, time_embed_dim, out_dim=None, cond_proj_dim=None,
                sample_proj_bias=True):
    d_out = time_embed_dim if out_dim is None else out_dim
    keys = jax.random.split(key, 5)
    params = {
        # nn.Linear weight is (Dout, Din); we persist the transpose (Din, Dout)
        # so the kernel does a plain row-major matmul (no per-tile transpose).
        "linear_1_w": jax.random.normal(keys[0], (in_channels, time_embed_dim),
                                        jnp.float32) / jnp.sqrt(in_channels),
        "linear_2_w": jax.random.normal(keys[1], (time_embed_dim, d_out),
                                        jnp.float32) / jnp.sqrt(time_embed_dim),
    }
    if sample_proj_bias:
        params["linear_1_b"] = jax.random.normal(keys[2], (time_embed_dim,),
                                                 jnp.float32) * 0.01
        params["linear_2_b"] = jax.random.normal(keys[3], (d_out,),
                                                 jnp.float32) * 0.01
    if cond_proj_dim is not None:
        params["cond_proj_w"] = jax.random.normal(keys[4], (cond_proj_dim, in_channels),
                                                  jnp.float32) / jnp.sqrt(cond_proj_dim)
    return params


def reference_forward(params, sample, condition=None, *, act_fn="silu",
                      post_act_fn=None):
    hp = jax.lax.Precision.HIGHEST
    if condition is not None:
        sample = sample + jnp.dot(condition, params["cond_proj_w"], precision=hp)
    h = jnp.dot(sample, params["linear_1_w"], precision=hp)
    if "linear_1_b" in params:
        h = h + params["linear_1_b"]
    h = _apply_act(h, act_fn)
    out = jnp.dot(h, params["linear_2_w"], precision=hp)
    if "linear_2_b" in params:
        out = out + params["linear_2_b"]
    return _apply_act(out, post_act_fn)


# ----------------------------------------------------------------------------
if __name__ == "__main__":
    key = jax.random.PRNGKey(0)
    k_param, k_param2, k_x, k_c = jax.random.split(key, 4)

    B, in_channels, time_embed_dim = 2, 32, 384

    # ---- case 1: plain path (no condition), silu, biases ----
    params = init_params(k_param, in_channels, time_embed_dim,
                         out_dim=None, cond_proj_dim=None, sample_proj_bias=True)
    sample = jax.random.normal(k_x, (B, in_channels), jnp.float32)

    out = timestep_embedding_forward(params, sample, None,
                                     act_fn="silu", post_act_fn=None)
    out = jax.block_until_ready(out)
    ref = reference_forward(params, sample, None, act_fn="silu", post_act_fn=None)
    assert out.shape == (B, time_embed_dim)
    assert jnp.allclose(out, ref, atol=2e-3, rtol=2e-3), "mismatch (plain path)"

    # ---- case 2: cond_proj path fused into the same kernel ----
    cond_dim = 64
    params2 = init_params(k_param2, in_channels, time_embed_dim,
                          out_dim=None, cond_proj_dim=cond_dim, sample_proj_bias=True)
    condition = jax.random.normal(k_c, (B, cond_dim), jnp.float32)

    out2 = timestep_embedding_forward(params2, sample, condition,
                                      act_fn="silu", post_act_fn=None)
    out2 = jax.block_until_ready(out2)
    ref2 = reference_forward(params2, sample, condition,
                             act_fn="silu", post_act_fn=None)
    assert out2.shape == (B, time_embed_dim)
    assert jnp.allclose(out2, ref2, atol=2e-3, rtol=2e-3), "mismatch (cond path)"

    print("KERNEL_OK")
</pallas_src>

<mosaic_0001>
module attributes {stable_mosaic.version = 11 : i64} {
  func.func @kernel(%arg0: i32, %arg1: memref<8x32xf32, #tpu.memory_space<vmem>>, %arg2: memref<32x384xf32, #tpu.memory_space<vmem>>, %arg3: memref<1x384xf32, #tpu.memory_space<vmem>>, %arg4: memref<384x384xf32, #tpu.memory_space<vmem>>, %arg5: memref<1x384xf32, #tpu.memory_space<vmem>>, %arg6: memref<8x384xf32, #tpu.memory_space<vmem>>) attributes {dimension_semantics = [#tpu.dimension_semantics<parallel>], iteration_bounds = array<i64: 1>, scalar_prefetch = 0 : i64, scratch_operands = 0 : i64, tpu.core_type = #tpu.core_type<tc>, window_params = [{transform_indices = @transform_0, window_bounds = array<i64: 8, 32>}, {pipeline_mode = #tpu.pipeline_mode<synchronous>, transform_indices = @transform_1, window_bounds = array<i64: 32, 384>}, {pipeline_mode = #tpu.pipeline_mode<synchronous>, transform_indices = @transform_2, window_bounds = array<i64: 1, 384>}, {pipeline_mode = #tpu.pipeline_mode<synchronous>, transform_indices = @transform_3, window_bounds = array<i64: 384, 384>}, {pipeline_mode = #tpu.pipeline_mode<synchronous>, transform_indices = @transform_4, window_bounds = array<i64: 1, 384>}, {transform_indices = @transform_5, window_bounds = array<i64: 8, 384>}]} {
    %c0 = arith.constant 0 : index
    %c0_0 = arith.constant 0 : index
    %0 = vector.load %arg1[%c0, %c0_0] : memref<8x32xf32, #tpu.memory_space<vmem>>, vector<8x32xf32>
    %c0_1 = arith.constant 0 : index
    %c0_2 = arith.constant 0 : index
    %1 = vector.load %arg2[%c0_1, %c0_2] : memref<32x384xf32, #tpu.memory_space<vmem>>, vector<32x384xf32>
    %cst = arith.constant dense<0.000000e+00> : vector<8x384xf32>
    %2 = tpu.matmul %0, %1, %cst {dimension_numbers = #tpu.dot_dimension_numbers<[1], [0], [0], [1], [0, 0, 1, 1], [], []>} : vector<8x32xf32>, vector<32x384xf32>, vector<8x384xf32> -> vector<8x384xf32>
    %c0_3 = arith.constant 0 : index
    %c0_4 = arith.constant 0 : index
    %3 = vector.load %arg3[%c0_3, %c0_4] : memref<1x384xf32, #tpu.memory_space<vmem>>, vector<1x384xf32>
    %4 = vector.broadcast %3 : vector<1x384xf32> to vector<8x384xf32>
    %5 = arith.addf %2, %4 : vector<8x384xf32>
    %6 = arith.negf %5 : vector<8x384xf32>
    %7 = math.exp %6 : vector<8x384xf32>
    %cst_5 = arith.constant 1.000000e+00 : f32
    %8 = vector.broadcast %cst_5 : f32 to vector<8x384xf32>
    %9 = arith.addf %8, %7 : vector<8x384xf32>
    %10 = arith.divf %8, %9 : vector<8x384xf32>
    %11 = arith.mulf %5, %10 : vector<8x384xf32>
    %c0_6 = arith.constant 0 : index
    %c0_7 = arith.constant 0 : index
    %12 = vector.load %arg4[%c0_6, %c0_7] : memref<384x384xf32, #tpu.memory_space<vmem>>, vector<384x384xf32>
    %cst_8 = arith.constant dense<0.000000e+00> : vector<8x384xf32>
    %13 = tpu.matmul %11, %12, %cst_8 {dimension_numbers = #tpu.dot_dimension_numbers<[1], [0], [0], [1], [0, 0, 1, 1], [], []>} : vector<8x384xf32>, vector<384x384xf32>, vector<8x384xf32> -> vector<8x384xf32>
    %c0_9 = arith.constant 0 : index
    %c0_10 = arith.constant 0 : index
    %14 = vector.load %arg5[%c0_9, %c0_10] : memref<1x384xf32, #tpu.memory_space<vmem>>, vector<1x384xf32>
    %15 = vector.broadcast %14 : vector<1x384xf32> to vector<8x384xf32>
    %16 = arith.addf %13, %15 : vector<8x384xf32>
    %c0_11 = arith.constant 0 : index
    %c0_12 = arith.constant 0 : index
    %17 = vector.load %arg6[%c0_11, %c0_12] : memref<8x384xf32, #tpu.memory_space<vmem>>, vector<8x384xf32>
    tpu.vector_store %arg6[%c0_11, %c0_12], %16 {strides = array<i32>} : memref<8x384xf32, #tpu.memory_space<vmem>>, vector<8x384xf32>,
    return
  }
  func.func @transform_0(%arg0: i32) -> (i32, i32) {
    %c0_i32 = arith.constant 0 : i32
    %c0_i32_0 = arith.constant 0 : i32
    return %arg0, %c0_i32 : i32, i32
  }
  func.func @transform_1(%arg0: i32) -> (i32, i32) {
    %c0_i32 = arith.constant 0 : i32
    %c0_i32_0 = arith.constant 0 : i32
    %c0_i32_1 = arith.constant 0 : i32
    return %c0_i32, %c0_i32_0 : i32, i32
  }
  func.func @transform_2(%arg0: i32) -> (i32, i32) {
    %c0_i32 = arith.constant 0 : i32
    %c0_i32_0 = arith.constant 0 : i32
    %c0_i32_1 = arith.constant 0 : i32
    return %c0_i32, %c0_i32_0 : i32, i32
  }
  func.func @transform_3(%arg0: i32) -> (i32, i32) {
    %c0_i32 = arith.constant 0 : i32
    %c0_i32_0 = arith.constant 0 : i32
    %c0_i32_1 = arith.constant 0 : i32
    return %c0_i32, %c0_i32_0 : i32, i32
  }
  func.func @transform_4(%arg0: i32) -> (i32, i32) {
    %c0_i32 = arith.constant 0 : i32
    %c0_i32_0 = arith.constant 0 : i32
    %c0_i32_1 = arith.constant 0 : i32
    return %c0_i32, %c0_i32_0 : i32, i32
  }
  func.func @transform_5(%arg0: i32) -> (i32, i32) {
    %c0_i32 = arith.constant 0 : i32
    %c0_i32_0 = arith.constant 0 : i32
    return %arg0, %c0_i32 : i32, i32
  }
}

</mosaic_0001>

<bundles_post_ra>
// kernel: tpu_custom_call.1
= control target key start
LH: loop header
LB: loop body
LE: loop exit
PB: predicated region body
PF: predicated region fallthrough
CT: control target
= control target key end

     0   :  { %10 = vsyncpa [#allocation3], 0  ;;  %s1249_s0 = inlined_call_operand.hbm [shape: f32[8,32], index: 0, kind: input, shape index: {}]   ;;  %s1250_s1 = inlined_call_operand.hbm [shape: f32[32,384], index: 1, kind: input, shape index: {}]   ;;  %s1251_s2 = inlined_call_operand.vmem [shape: f32[1,384], index: 2, kind: input, shape index: {}]   ;;  %s1252_s3 = inlined_call_operand.hbm [shape: f32[384,384], index: 3, kind: input, shape index: {}]   ;;  %s1253_s4 = inlined_call_operand.vmem [shape: f32[1,384], index: 4, kind: input, shape index: {}]   ;;  %s1254_s5 = inlined_call_operand.hbm [shape: f32[8,384], index: 5, kind: output, shape index: {}]  }
   0x1   :  { %11 = vsyncpa [#allocation6], 0 }
   0x2   :  { %12 = vsyncpa [#allocation4], 0  ;;  %s1111_s18 = smov [#allocation5]   ;;  %s1017_s22 = scalar_lea.hbm %s1250_s1, 1536 }
   0x3   :  { %s28_s19 = sshll.u32 %s1111_s18, 4  ;;  %p1018_p0 = scmp.ne.s32.totalorder %s1250_s1, %s1017_s22  ;;  %s29_s19 = int_to_ptr.vmem [resolvable:$true] %s28_s19 }
   0x4   :  { %p1021_p1 = scmp.lt.u32.totalorder %s1017_s22, %s1250_s1 }
   0x6   :  { %p1023_p2 = pnand %p1021_p1, %p1018_p0 }
   0x8   :  { %1026 = shalt.err (!%p1023_p2)
}
   0x9   :  { %s1027_s27 = scalar_lea.vmem %s29_s19, 1536  ;;  %p1032_p4 = scmp.lt.s32.totalorder %s29_s19, %s29_s19 }
   0xa   :  { %p1028_p3 = scmp.ne.s32.totalorder %s29_s19, %s1027_s27  ;;  %p1033_p5 = scmp.lt.s32.totalorder %s1027_s27, %s1027_s27 }
   0xc   :  { %p1034_p6 = por %p1033_p5, %p1032_p4 }
   0xe   :  { %p1035_p7 = pnand %p1034_p6, %p1028_p3 }
  0x10   :  { %1038 = shalt.err (!%p1035_p7)
}
  0x11   :  { %s1112_s28 = smov 384   ;;  %s1113_s29 = smov 24  }
  0x12   :  { %34 = dma.hbm_to_vmem [thread:$0]  %s1250_s1, 1536, %s29_s19, [#allocation6], %s1112_s28, %s1112_s28, %s1113_s29  }
  0x13   :  { %s1114_s7 = smov [#allocation2]   ;;  %s1115_s9 = smov [#allocation7]  }
  0x14   :  { %s19_s8 = sshll.u32 %s1114_s7, 4  ;;  %s42_s10 = sshll.u32 %s1115_s9, 4  ;;  %s20_s8 = int_to_ptr.vmem [resolvable:$true] %s19_s8  ;;  %s43_s10 = int_to_ptr.vmem [resolvable:$true] %s42_s10 }
  0x15   :  { %s1039_s13 = scalar_lea.hbm %s1249_s0, 128 }
  0x16   :  { %p1040_p8 = scmp.ne.s32.totalorder %s1249_s0, %s1039_s13  ;;  %p1043_p9 = scmp.lt.u32.totalorder %s1039_s13, %s1249_s0 }
  0x18   :  { %p1045_p10 = pnand %p1043_p9, %p1040_p8 }
  0x1a   :  { %1048 = shalt.err (!%p1045_p10)
}
  0x1b   :  { %s1049_s1 = scalar_lea.vmem %s20_s8, 128  ;;  %p1054_p12 = scmp.lt.s32.totalorder %s20_s8, %s20_s8 }
  0x1c   :  { %p1050_p11 = scmp.ne.s32.totalorder %s20_s8, %s1049_s1  ;;  %p1055_p13 = scmp.lt.s32.totalorder %s1049_s1, %s1049_s1 }
  0x1e   :  { %p1056_p0 = por %p1055_p13, %p1054_p12 }
  0x20   :  { %p1057_p1 = pnand %p1056_p0, %p1050_p11 }
  0x22   :  { %1060 = shalt.err (!%p1057_p1)
}
  0x23   :  { %22 = dma.hbm_to_vmem [thread:$0]  %s1249_s0, 128, %s20_s8, [#allocation3]  }
  0x24   :  { %s1061_s22 = scalar_lea.hbm %s1252_s3, 18432 }
  0x25   :  { %p1062_p2 = scmp.ne.s32.totalorder %s1252_s3, %s1061_s22  ;;  %p1065_p3 = scmp.lt.u32.totalorder %s1061_s22, %s1252_s3 }
  0x27   :  { %p1067_p4 = pnand %p1065_p3, %p1062_p2 }
  0x29   :  { %1070 = shalt.err (!%p1067_p4)
}
  0x2a   :  { %s1071_s27 = scalar_lea.vmem %s43_s10, 18432  ;;  %p1076_p6 = scmp.lt.s32.totalorder %s43_s10, %s43_s10 }
  0x2b   :  { %p1072_p5 = scmp.ne.s32.totalorder %s43_s10, %s1071_s27  ;;  %p1077_p7 = scmp.lt.s32.totalorder %s1071_s27, %s1071_s27 }
  0x2d   :  { %p1078_p8 = por %p1077_p7, %p1076_p6 }
  0x2f   :  { %p1079_p9 = pnand %p1078_p8, %p1072_p5 }
  0x31   :  { %1082 = shalt.err (!%p1079_p9)
}
  0x32   :  { %48 = dma.hbm_to_vmem [thread:$0]  %s1252_s3, 18432, %s43_s10, [#allocation6], %s1112_s28, %s1112_s28, %s1113_s29  }
  0x33   :  { %1105 = dma.done.wait [#allocation3], 128  }
  0x34   :  { %1106 = vsyncadd [#allocation3], 4294967168 }
  0x35   :  { %1107 = dma.done.wait [#allocation6], 19968  }
  0x36   :  { %1108 = vsyncadd [#allocation6], 4294947328  ;;  %v1116_v0 = vmov 0.0   ;;  %v62_v1 = vld [vmem:[#allocation5 + $0x8] sm:$0xff]  ;;  %v65_v2 = vld [vmem:[#allocation5 + $0x20] sm:$0xff]  ;;  %vm90_vm0 = vcmask 261120  }
  0x37   :  { %158 = vmatprep.mubr.f32.mxu1 %v1116_v0  ;;  %v61_v3 = vld [vmem:[#allocation5] sm:$0xff]  ;;  %v826_v4 = vpack.c.bf16 %v65_v2, %v62_v1  ;;  %v64_v5 = vld [vmem:[#allocation5 + $0x18] sm:$0xff]  ;;  %v71_v7 = vld [vmem:[#allocation5 + $0x50] sm:$0xff]  ;;  %v1117_v30 = vmov 0.0|0.0   ;;  %vm1118_vm1 = vmmov 0   ;;  %s1119_s6 = smov [#allocation8]  }
  0x38   :  { %v68_v6 = vld [vmem:[#allocation5 + $0x38] sm:$0xff]  ;;  %v828_v8 = vpack.c.bf16 %v64_v5, %v61_v3  ;;  %v67_v10 = vld [vmem:[#allocation5 + $0x30] sm:$0xff]  ;;  %v70_v11 = vld [vmem:[#allocation5 + $0x48] sm:$0xff]  ;;  %s708_s7 = sshll.u32 %s1119_s6, 4  ;;  %s709_s7 = int_to_ptr.vmem [resolvable:$true] %s708_s7 }
  0x39   :  { %v830_v9 = vpack.c.bf16 %v71_v7, %v68_v6  ;;  %827 = vmatprep.subr.bf16.mxu1 %v826_v4  ;;  %v63_v12 = vld [vmem:[#allocation5 + $0x10] sm:$0xff]  ;;  %v832_v13 = vpack.c.bf16 %v70_v11, %v67_v10  ;;  %v66_v14 = vld [vmem:[#allocation5 + $0x28] sm:$0xff]  ;;  %v260_v16 = vld [vmem:[#allocation7 + $0x20] sm:$0xff]  ;;  %p1088_p11 = scmp.lt.s32.totalorder %s709_s7, %s709_s7 }
  0x3a   :  { %829 = vmatpush1.bf16.msra.mxu1 %v828_v8  ;;  %v257_v15 = vld [vmem:[#allocation7 + $0x8] sm:$0xff]  ;;  %v256_v18 = vld [vmem:[#allocation7] sm:$0xff]  ;;  %v259_v19 = vld [vmem:[#allocation7 + $0x18] sm:$0xff]  ;;  %v835_v29 = vpack.c.bf16 %v66_v14, %v63_v12 }
  0x3b   :  { %831 = vmatprep.subr.bf16.mxu1 %v830_v9  ;;  %v840_v17 = vpack.c.bf16 %v260_v16, %v257_v15  ;;  %v263_v20 = vld [vmem:[#allocation7 + $0x38] sm:$0xff]  ;;  %v842_v21 = vpack.c.bf16 %v259_v19, %v256_v18  ;;  %v266_v22 = vld [vmem:[#allocation7 + $0x50] sm:$0xff]  ;;  %v265_v24 = vld [vmem:[#allocation7 + $0x48] sm:$0xff] }
  0x3c   :  { %v262_v23 = vld [vmem:[#allocation7 + $0x30] sm:$0xff]  ;;  %v844_v25 = vpack.c.bf16 %v266_v22, %v263_v20  ;;  %v269_v26 = vld [vmem:[#allocation7 + $0x68] sm:$0xff]  ;;  %v272_v27 = vld [vmem:[#allocation7 + $0x80] sm:$0xff] }
  0x3d   :  { %841 = vmatprep.subr.bf16.mxu0 %v840_v17  ;;  %v60_v28 = vld [vmem:[#allocation2] sm:$0xff]  ;;  %v69_v31 = vld [vmem:[#allocation5 + $0x40] sm:$0xff]  ;;  %v846_v33 = vpack.c.bf16 %v265_v24, %v262_v23  ;;  %v848_v34 = vpack.c.bf16 %v272_v27, %v269_v26  ;;  %v278_v38 = vld [vmem:[#allocation7 + $0xb0] sm:$0xff] }
  0x3e   :  { %833 = vmatpush1.bf16.msra.mxu1 %v832_v13  ;;  %843 = vmatpush1.bf16.msra.mxu0 %v842_v21  ;;  %v72_v32 = vld [vmem:[#allocation5 + $0x58] sm:$0xff]  ;;  %v268_v35 = vld [vmem:[#allocation7 + $0x60] sm:$0xff]  ;;  %v274_v42 = vld [vmem:[#allocation7 + $0x90] sm:$0xff] }
  0x3f   :  { %834 = vmatprep.subr.bf16.mxu1 %v1117_v30  ;;  %845 = vmatprep.subr.bf16.mxu0 %v844_v25  ;;  %v271_v36 = vld [vmem:[#allocation7 + $0x78] sm:$0xff]  ;;  %v838_v39 = vpack.c.bf16 %v72_v32, %v69_v31  ;;  %v277_v43 = vld [vmem:[#allocation7 + $0xa8] sm:$0xff]  ;;  %v284_v45 = vld [vmem:[#allocation7 + $0xe0] sm:$0xff] }
  0x40   :  { %v275_v37 = vld [vmem:[#allocation7 + $0x98] sm:$0xff]  ;;  %v850_v40 = vpack.c.bf16 %v271_v36, %v268_v35  ;;  %v281_v44 = vld [vmem:[#allocation7 + $0xc8] sm:$0xff]  ;;  %v854_v46 = vpack.c.bf16 %v277_v43, %v274_v42  ;;  %v280_v48 = vld [vmem:[#allocation7 + $0xc0] sm:$0xff] }
  0x41   :  { %718 = vmatmul.mubr.msk.f32.vlgmr.msra.gmra.mrb[0].mxu1 %vm90_vm0, %v60_v28  ;;  %v852_v41 = vpack.c.bf16 %v278_v38, %v275_v37  ;;  %v856_v47 = vpack.c.bf16 %v284_v45, %v281_v44  ;;  %v283_v49 = vld [vmem:[#allocation7 + $0xd8] sm:$0xff]  ;;  %v290_v51 = vld [vmem:[#allocation7 + $0x110] sm:$0xff]  ;;  %v289_v55 = vld [vmem:[#allocation7 + $0x108] sm:$0xff] }
  0x42   :  { %836 = vmatpush3.bf16.msra.mxu1 %v835_v29  ;;  %788 = vmatprep.mubr.msk.f32.mxu1 %vm1118_vm1, %v1116_v0  ;;  %v287_v50 = vld [vmem:[#allocation7 + $0xf8] sm:$0xff]  ;;  %v858_v52 = vpack.c.bf16 %v283_v49, %v280_v48  ;;  %v286_v54 = vld [vmem:[#allocation7 + $0xf0] sm:$0xff]  ;;  %v293_v56 = vld [vmem:[#allocation7 + $0x128] sm:$0xff] }
  0x43   :  { %837 = vmatprep.subr.bf16.mxu1 %v1117_v30  ;;  %847 = vmatpush1.bf16.msra.mxu0 %v846_v33  ;;  %v860_v53 = vpack.c.bf16 %v290_v51, %v287_v50  ;;  %v296_v57 = vld [vmem:[#allocation7 + $0x140] sm:$0xff]  ;;  %v862_v58 = vpack.c.bf16 %v289_v55, %v286_v54  ;;  %v295_v61 = vld [vmem:[#allocation7 + $0x138] sm:$0xff]  ;;  %v302_v63 = vld [vmem:[#allocation7 + $0x170] sm:$0xff] }
  0x44   :  { %849 = vmatprep.subr.bf16.mxu0 %v848_v34  ;;  %v864_v59 = vpack.c.bf16 %v296_v57, %v293_v56  ;;  %v292_v60 = vld [vmem:[#allocation7 + $0x120] sm:$0xff]  ;;  %v299_v62 = vld [vmem:[#allocation7 + $0x158] sm:$0xff]  ;;  %v298_v3 = vld [vmem:[#allocation7 + $0x150] sm:$0xff] }
  0x45   :  { %v866_v1 = vpack.c.bf16 %v295_v61, %v292_v60  ;;  %v868_v2 = vpack.c.bf16 %v302_v63, %v299_v62  ;;  %v301_v4 = vld [vmem:[#allocation7 + $0x168] sm:$0xff]  ;;  %v308_v7 = vld [vmem:[#allocation7 + $0x1a0] sm:$0xff]  ;;  %v306_v8 = vld [vmem:[#allocation7 + $0x190] sm:$0xff] }
  0x46   :  { %839 = vmatpush3.bf16.msra.mxu1 %v838_v39  ;;  %v870_v5 = vpack.c.bf16 %v301_v4, %v298_v3  ;;  %v305_v6 = vld [vmem:[#allocation7 + $0x188] sm:$0xff]  ;;  %v304_v11 = vld [vmem:[#allocation7 + $0x180] sm:$0xff]  ;;  %v307_v12 = vld [vmem:[#allocation7 + $0x198] sm:$0xff] }
  0x47   :  { %851 = vmatpush1.bf16.msra.mxu0 %v850_v40  ;;  %v872_v9 = vpack.c.bf16 %v308_v7, %v305_v6  ;;  %v309_v10 = vld [vmem:[#allocation7 + $0x1a8] sm:$0xff]  ;;  %v874_v14 = vpack.c.bf16 %v307_v12, %v304_v11  ;;  %v258_v15 = vld [vmem:[#allocation7 + $0x10] sm:$0xff]  ;;  %v311_v18 = vld [vmem:[#allocation7 + $0x1b8] sm:$0xff] }
  0x48   :  { %853 = vmatprep.subr.bf16.mxu0 %v852_v41  ;;  %v936_v13 = vpack.c.bf16 %v309_v10, %v306_v8  ;;  %v261_v16 = vld [vmem:[#allocation7 + $0x28] sm:$0xff]  ;;  %v314_v19 = vld [vmem:[#allocation7 + $0x1d0] sm:$0xff]  ;;  %v312_v20 = vld [vmem:[#allocation7 + $0x1c0] sm:$0xff] }
  0x49   :  { %789 = vmatmul.mubr.msk.f32.vlgmr.msra.gmra.mrb[2].mxu1 %vm90_vm0, %v60_v28  ;;  %v938_v17 = vpack.c.bf16 %v261_v16, %v258_v15  ;;  %v876_v21 = vpack.c.bf16 %v314_v19, %v311_v18  ;;  %v315_v22 = vld [vmem:[#allocation7 + $0x1d8] sm:$0xff]  ;;  %v310_v23 = vld [vmem:[#allocation7 + $0x1b0] sm:$0xff]  ;;  %v313_v24 = vld [vmem:[#allocation7 + $0x1c8] sm:$0xff] }
  0x4a   :  { %937 = vmatprep.subr.bf16.mxu1 %v936_v13  ;;  %v940_v25 = vpack.c.bf16 %v315_v22, %v312_v20  ;;  %v878_v26 = vpack.c.bf16 %v313_v24, %v310_v23  ;;  %v264_v27 = vld [vmem:[#allocation7 + $0x40] sm:$0xff]  ;;  %v267_v28 = vld [vmem:[#allocation7 + $0x58] sm:$0xff]  ;;  %v317_v31 = vld [vmem:[#allocation7 + $0x1e8] sm:$0xff] }
  0x4b   :  { %855 = vmatpush1.bf16.msra.mxu0 %v854_v46  ;;  %939 = vmatpush3.bf16.msra.mxu1 %v938_v17  ;;  %v942_v29 = vpack.c.bf16 %v267_v28, %v264_v27  ;;  %v320_v32 = vld [vmem:[#allocation7 + $0x200] sm:$0xff]  ;;  %v318_v33 = vld [vmem:[#allocation7 + $0x1f0] sm:$0xff]  ;;  %v321_v35 = vld [vmem:[#allocation7 + $0x208] sm:$0xff] }
  0x4c   :  { %857 = vmatprep.subr.bf16.mxu0 %v856_v47  ;;  %941 = vmatprep.subr.bf16.mxu1 %v940_v25  ;;  %v880_v34 = vpack.c.bf16 %v320_v32, %v317_v31  ;;  %v316_v36 = vld [vmem:[#allocation7 + $0x1e0] sm:$0xff]  ;;  %v319_v37 = vld [vmem:[#allocation7 + $0x1f8] sm:$0xff]  ;;  %v944_v38 = vpack.c.bf16 %v321_v35, %v318_v33  ;;  %v270_v40 = vld [vmem:[#allocation7 + $0x70] sm:$0xff] }
  0x4d   :  { %v882_v39 = vpack.c.bf16 %v319_v37, %v316_v36  ;;  %v273_v41 = vld [vmem:[#allocation7 + $0x88] sm:$0xff]  ;;  %v323_v43 = vld [vmem:[#allocation7 + $0x218] sm:$0xff]  ;;  %v326_v44 = vld [vmem:[#allocation7 + $0x230] sm:$0xff] }
  0x4e   :  { %v946_v42 = vpack.c.bf16 %v273_v41, %v270_v40  ;;  %v324_v45 = vld [vmem:[#allocation7 + $0x220] sm:$0xff]  ;;  %v884_v46 = vpack.c.bf16 %v326_v44, %v323_v43  ;;  %v327_v47 = vld [vmem:[#allocation7 + $0x238] sm:$0xff]  ;;  %v322_v48 = vld [vmem:[#allocation7 + $0x210] sm:$0xff]  ;;  %v75_v44 = vlaneseq }
  0x4f   :  { %859 = vmatpush1.bf16.msra.mxu0 %v858_v52  ;;  %943 = vmatpush3.bf16.msra.mxu1 %v942_v29  ;;  %v325_v49 = vld [vmem:[#allocation7 + $0x228] sm:$0xff]  ;;  %v948_v50 = vpack.c.bf16 %v327_v47, %v324_v45  ;;  %v276_v52 = vld [vmem:[#allocation7 + $0xa0] sm:$0xff]  ;;  %v330_v57 = vld [vmem:[#allocation7 + $0x250] sm:$0xff] }
  0x50   :  { %861 = vmatprep.subr.bf16.mxu0 %v860_v53  ;;  %945 = vmatprep.subr.bf16.mxu1 %v944_v38  ;;  %v886_v51 = vpack.c.bf16 %v325_v49, %v322_v48  ;;  %v279_v53 = vld [vmem:[#allocation7 + $0xb8] sm:$0xff]  ;;  %v329_v55 = vld [vmem:[#allocation7 + $0x248] sm:$0xff]  ;;  %v332_v56 = vld [vmem:[#allocation7 + $0x260] sm:$0xff]  ;;  %v1200_v45 = vshrl.u32 %v75_v44, 7 }
  0x51   :  { %v950_v54 = vpack.c.bf16 %v279_v53, %v276_v52  ;;  %v328_v60 = vld [vmem:[#allocation7 + $0x240] sm:$0xff]  ;;  %v331_v61 = vld [vmem:[#allocation7 + $0x258] sm:$0xff]  ;;  %v337_v10 = vld [vmem:[#allocation7 + $0x288] sm:$0xff] }
  0x52   :  { %v890_v63 = vpack.c.bf16 %v331_v61, %v328_v60  ;;  %v335_v4 = vld [vmem:[#allocation7 + $0x278] sm:$0xff]  ;;  %v336_v6 = vld [vmem:[#allocation7 + $0x280] sm:$0xff]  ;;  %v341_v16 = vld [vmem:[#allocation7 + $0x2a8] sm:$0xff]  ;;  %v81_v48 = vsub.s32 1, %v1200_v45 }
  0x53   :  { %863 = vmatpush1.bf16.msra.mxu0 %v862_v58  ;;  %947 = vmatpush3.bf16.msra.mxu1 %v946_v42  ;;  %v888_v58 = vpack.c.bf16 %v332_v56, %v329_v55  ;;  %v339_v8 = vld [vmem:[#allocation7 + $0x298] sm:$0xff]  ;;  %v288_v13 = vld [vmem:[#allocation7 + $0x100] sm:$0xff]  ;;  %v342_v18 = vld [vmem:[#allocation7 + $0x2b0] sm:$0xff] }
  0x54   :  { %865 = vmatprep.subr.bf16.mxu0 %v864_v59  ;;  %949 = vmatprep.subr.bf16.mxu1 %v948_v50  ;;  %v333_v59 = vld [vmem:[#allocation7 + $0x268] sm:$0xff]  ;;  %v956_v11 = vpack.c.bf16 %v339_v8, %v336_v6  ;;  %v344_v17 = vld [vmem:[#allocation7 + $0x2c0] sm:$0xff]  ;;  %v343_v22 = vld [vmem:[#allocation7 + $0x2b8] sm:$0xff] }
  0x55   :  { %v952_v62 = vpack.c.bf16 %v333_v59, %v330_v57  ;;  %v896_v19 = vpack.c.bf16 %v344_v17, %v341_v16  ;;  %v345_v20 = vld [vmem:[#allocation7 + $0x2c8] sm:$0xff]  ;;  %v294_v25 = vld [vmem:[#allocation7 + $0x130] sm:$0xff]  ;;  %v347_v28 = vld [vmem:[#allocation7 + $0x2d8] sm:$0xff] }
  0x56   :  { %v960_v23 = vpack.c.bf16 %v345_v20, %v342_v18  ;;  %v350_v29 = vld [vmem:[#allocation7 + $0x2f0] sm:$0xff]  ;;  %v348_v31 = vld [vmem:[#allocation7 + $0x2e0] sm:$0xff]  ;;  %v351_v33 = vld [vmem:[#allocation7 + $0x2f8] sm:$0xff] }
  0x57   :  { %867 = vmatpush1.bf16.msra.mxu0 %v866_v1  ;;  %951 = vmatpush3.bf16.msra.mxu1 %v950_v54  ;;  %v282_v1 = vld [vmem:[#allocation7 + $0xd0] sm:$0xff]  ;;  %v900_v32 = vpack.c.bf16 %v350_v29, %v347_v28  ;;  %v349_v35 = vld [vmem:[#allocation7 + $0x2e8] sm:$0xff]  ;;  %v964_v36 = vpack.c.bf16 %v351_v33, %v348_v31  ;;  %v300_v38 = vld [vmem:[#allocation7 + $0x160] sm:$0xff] }
  0x58   :  { %869 = vmatprep.subr.bf16.mxu0 %v868_v2  ;;  %v285_v2 = vld [vmem:[#allocation7 + $0xe8] sm:$0xff]  ;;  %953 = vmatprep.subr.bf16.mxu1 %v952_v62  ;;  %v356_v42 = vld [vmem:[#allocation7 + $0x320] sm:$0xff]  ;;  %v73_v47 = vld [vmem:[%s1251_s2] sm:$0x7] }
  0x59   :  { %v954_v3 = vpack.c.bf16 %v285_v2, %v282_v1  ;;  %v353_v41 = vld [vmem:[#allocation7 + $0x308] sm:$0xff]  ;;  %v82_v50 = vrot.slane %v73_v47, %v81_v48  ;;  %v359_v8 = vld [vmem:[#allocation7 + $0x338] sm:$0xff]  ;;  %v366_v28 = vld [vmem:[#allocation7 + $0x370] sm:$0xff] }
  0x5a   :  { %v904_v43 = vpack.c.bf16 %v356_v42, %v353_v41  ;;  %v357_v6 = vld [vmem:[#allocation7 + $0x328] sm:$0xff]  ;;  %v363_v20 = vld [vmem:[#allocation7 + $0x358] sm:$0xff]  ;;  %v380_v41 = vld [vmem:[#allocation7 + $0x3e0] sm:$0xff] }
  0x5b   :  { %871 = vmatpush1.bf16.msra.mxu0 %v870_v5  ;;  %v338_v5 = vld [vmem:[#allocation7 + $0x290] sm:$0xff]  ;;  %955 = vmatpush3.bf16.msra.mxu1 %v954_v3  ;;  %v352_v3 = vld [vmem:[#allocation7 + $0x300] sm:$0xff]  ;;  %v361_v18 = vld [vmem:[#allocation7 + $0x348] sm:$0xff] }
  0x5c   :  { %873 = vmatprep.subr.bf16.mxu0 %v872_v9  ;;  %v892_v7 = vpack.c.bf16 %v338_v5, %v335_v4  ;;  %v334_v9 = vld [vmem:[#allocation7 + $0x270] sm:$0xff]  ;;  %957 = vmatprep.subr.bf16.mxu1 %v956_v11  ;;  %v355_v4 = vld [vmem:[#allocation7 + $0x318] sm:$0xff]  ;;  %v369_v29 = vld [vmem:[#allocation7 + $0x388] sm:$0xff] }
  0x5d   :  { %v894_v12 = vpack.c.bf16 %v337_v10, %v334_v9  ;;  %v354_v5 = vld [vmem:[#allocation7 + $0x310] sm:$0xff]  ;;  %v371_v31 = vld [vmem:[#allocation7 + $0x398] sm:$0xff]  ;;  %v376_v44 = vld [vmem:[#allocation7 + $0x3c0] sm:$0xff] }
  0x5e   :  { %v362_v9 = vld [vmem:[#allocation7 + $0x350] sm:$0xff] }
  0x5f   :  { %875 = vmatpush1.bf16.msra.mxu0 %v874_v14  ;;  %v291_v14 = vld [vmem:[#allocation7 + $0x118] sm:$0xff]  ;;  %v908_v17 = vpack.c.bf16 %v362_v9, %v359_v8  ;;  %v390_v8 = vld [vmem:[#allocation7 + $0x430] sm:$0xff]  ;;  %v393_v9 = vld [vmem:[#allocation7 + $0x448] sm:$0xff] }
  0x60   :  { %877 = vmatprep.subr.bf16.mxu0 %v876_v21  ;;  %v958_v15 = vpack.c.bf16 %v291_v14, %v288_v13  ;;  %v340_v21 = vld [vmem:[#allocation7 + $0x2a0] sm:$0xff]  ;;  %v906_v13 = vpack.c.bf16 %v355_v4, %v352_v3  ;;  %v969_v14 = vpack.c.bf16 %v357_v6, %v354_v5 }
  0x61   :  { %v898_v24 = vpack.c.bf16 %v343_v22, %v340_v21  ;;  %v365_v21 = vld [vmem:[#allocation7 + $0x368] sm:$0xff]  ;;  %v368_v22 = vld [vmem:[#allocation7 + $0x380] sm:$0xff] }
  0x62   :  { %959 = vmatpush3.bf16.msra.mxu1 %v958_v15  ;;  %v358_v15 = vld [vmem:[#allocation7 + $0x330] sm:$0xff]  ;;  %v388_v5 = vld [vmem:[#allocation7 + $0x420] sm:$0xff] }
  0x63   :  { %879 = vmatpush1.bf16.msra.mxu0 %v878_v26  ;;  %v297_v26 = vld [vmem:[#allocation7 + $0x148] sm:$0xff]  ;;  %961 = vmatprep.subr.bf16.mxu1 %v960_v23  ;;  %v910_v23 = vpack.c.bf16 %v361_v18, %v358_v15  ;;  %v399_v18 = vld [vmem:[#allocation7 + $0x478] sm:$0xff] }
  0x64   :  { %881 = vmatprep.subr.bf16.mxu0 %v880_v34  ;;  %v962_v27 = vpack.c.bf16 %v297_v26, %v294_v25  ;;  %v346_v34 = vld [vmem:[#allocation7 + $0x2d0] sm:$0xff]  ;;  %v364_v25 = vld [vmem:[#allocation7 + $0x360] sm:$0xff]  ;;  %v912_v26 = vpack.c.bf16 %v368_v22, %v365_v21 }
  0x65   :  { %v902_v37 = vpack.c.bf16 %v349_v35, %v346_v34  ;;  %v975_v34 = vpack.c.bf16 %v369_v29, %v366_v28  ;;  %v370_v35 = vld [vmem:[#allocation7 + $0x390] sm:$0xff] }
  0x66   :  { %963 = vmatpush3.bf16.msra.mxu1 %v962_v27  ;;  %v367_v27 = vld [vmem:[#allocation7 + $0x378] sm:$0xff] }
  0x67   :  { %883 = vmatpush1.bf16.msra.mxu0 %v882_v39  ;;  %v303_v39 = vld [vmem:[#allocation7 + $0x178] sm:$0xff]  ;;  %965 = vmatprep.subr.bf16.mxu1 %v964_v36  ;;  %v914_v33 = vpack.c.bf16 %v367_v27, %v364_v25 }
  0x68   :  { %885 = vmatprep.subr.bf16.mxu0 %v884_v46  ;;  %v966_v40 = vpack.c.bf16 %v303_v39, %v300_v38  ;;  %v77_v46 = vsub.s32 0, %v1200_v45  ;;  %v372_v38 = vld [vmem:[#allocation7 + $0x3a0] sm:$0xff]  ;;  %v375_v39 = vld [vmem:[#allocation7 + $0x3b8] sm:$0xff] }
  0x6a   :  { %967 = vmatpush3.bf16.msra.mxu1 %v966_v40  ;;  %v78_v49 = vrot.slane %v73_v47, %v77_v46  ;;  %v377_v40 = vld [vmem:[#allocation7 + $0x3c8] sm:$0xff] }
  0x6b   :  { %887 = vmatpush1.bf16.msra.mxu0 %v886_v51  ;;  %968 = vmatprep.subr.bf16.mxu1 %v1117_v30 }
  0x6c   :  { %889 = vmatprep.subr.bf16.mxu0 %v888_v58 }
  0x6f   :  { %891 = vmatpush1.bf16.msra.mxu0 %v890_v63  ;;  %v85_v63 = vsub.s32 2, %v1200_v45 }
  0x70   :  { %893 = vmatprep.subr.bf16.mxu0 %v892_v7 }
  0x71   :  { %v86_v1 = vrot.slane %v73_v47, %v85_v63  ;;  %v920_v47 = vpack.c.bf16 %v380_v41, %v377_v40 }
  0x73   :  { %895 = vmatpush1.bf16.msra.mxu0 %v894_v12 }
  0x74   :  { %897 = vmatprep.subr.bf16.mxu0 %v896_v19  ;;  %v360_v19 = vld [vmem:[#allocation7 + $0x340] sm:$0xff] }
  0x77   :  { %899 = vmatpush1.bf16.msra.mxu0 %v898_v24  ;;  %v972_v24 = vpack.c.bf16 %v363_v20, %v360_v19 }
  0x78   :  { %901 = vmatprep.subr.bf16.mxu0 %v900_v32  ;;  %v374_v32 = vld [vmem:[#allocation7 + $0x3b0] sm:$0xff] }
  0x79   :  { %v916_v36 = vpack.c.bf16 %v374_v32, %v371_v31 }
  0x7b   :  { %903 = vmatpush1.bf16.msra.mxu0 %v902_v37  ;;  %v373_v37 = vld [vmem:[#allocation7 + $0x3a8] sm:$0xff] }
  0x7c   :  { %905 = vmatprep.subr.bf16.mxu0 %v904_v43  ;;  %v918_v42 = vpack.c.bf16 %v373_v37, %v370_v35  ;;  %v978_v43 = vpack.c.bf16 %v375_v39, %v372_v38 }
 0x114   :  { %v160_v51 = vpop.f32.mrb[0].mxu1 }
 0x115   :  { %v161_v52 = vadd.f32 %v160_v51, %v78_v49  ;;  %v162_v53 = vpop.f32.mrb[1].mxu1  ;;  %v379_v49 = vld [vmem:[#allocation7 + $0x3d8] sm:$0xff]  ;;  %v381_v51 = vld [vmem:[#allocation7 + $0x3e8] sm:$0xff] }
 0x116   :  { %v163_v54 = vadd.f32 %v162_v53, %v82_v50  ;;  %v378_v50 = vld [vmem:[#allocation7 + $0x3d0] sm:$0xff] }
 0x117   :  { %v720_v55 = vmul.f32 -1.442695, %v161_v52  ;;  %v386_v53 = vld [vmem:[#allocation7 + $0x410] sm:$0xff] }
 0x118   :  { %v721_v56 = vmul.f32 -1.442695, %v163_v54 }
 0x119   :  { %1005 = vpow2.f32 %v720_v55  ;;  %v922_v55 = vpack.c.bf16 %v379_v49, %v376_v44 }
 0x11a   :  { %1007 = vpow2.f32 %v721_v56  ;;  %v981_v56 = vpack.c.bf16 %v381_v51, %v378_v50 }
 0x11c   :  { %v231_v57 = vpop.f32.mrb[2].mxu1 }
 0x11d   :  { %v790_v58 = vpop.f32.mrb[3].mxu1  ;;  %v1214_v2 = vadd.f32 %v231_v57, %v86_v1  ;;  %v382_v57 = vld [vmem:[#allocation7 + $0x3f0] sm:$0xff]  ;;  %v392_v1 = vld [vmem:[#allocation7 + $0x440] sm:$0xff] }
 0x11f   :  { %v722_v11 = vmul.f32 -1.442695, %v1214_v2 }
 0x123   :  { %v1006_v59 = vpop.eup %1005 }
 0x124   :  { %v1008_v60 = vpop.eup %1007  ;;  %v244_v61 = vadd.f32 1.0, %v1006_v59  ;;  %v385_v59 = vld [vmem:[#allocation7 + $0x408] sm:$0xff] }
 0x125   :  { %v245_v62 = vadd.f32 1.0, %v1008_v60  ;;  %v384_v60 = vld [vmem:[#allocation7 + $0x400] sm:$0xff]  ;;  %v926_v3 = vpack.c.bf16 %v385_v59, %v382_v57 }
 0x126   :  { %1009 = vrcp.f32 %v244_v61  ;;  %v387_v61 = vld [vmem:[#allocation7 + $0x418] sm:$0xff] }
 0x127   :  { %1011 = vrcp.f32 %v245_v62  ;;  %v389_v62 = vld [vmem:[#allocation7 + $0x428] sm:$0xff]  ;;  %v984_v4 = vpack.c.bf16 %v387_v61, %v384_v60 }
 0x128   :  { %1013 = vpow2.f32 %v722_v11  ;;  %v928_v6 = vpack.c.bf16 %v392_v1, %v389_v62  ;;  %v398_v11 = vld [vmem:[#allocation7 + $0x470] sm:$0xff] }
 0x130   :  { %v1010_v7 = vpop.eup %1009 }
 0x131   :  { %v1012_v10 = vpop.eup %1011  ;;  %v253_v16 = vmul.f32 %v1010_v7, %v161_v52  ;;  %v383_v52 = vld [vmem:[#allocation7 + $0x3f8] sm:$0xff] }
 0x132   :  { %v254_v12 = vmul.f32 %v1012_v10, %v163_v54  ;;  %v924_v58 = vpack.c.bf16 %v386_v53, %v383_v52  ;;  %v391_v7 = vld [vmem:[#allocation7 + $0x438] sm:$0xff] }
 0x133   :  { %v395_v10 = vld [vmem:[#allocation7 + $0x458] sm:$0xff] }
 0x134   :  { %481 = vmatprep.mubr.f32.mxu0 %v254_v12  ;;  %623 = vmatprep.mubr.f32.mxu1 %v254_v12  ;;  %v930_v12 = vpack.c.bf16 %v391_v7, %v388_v5  ;;  %v932_v15 = vpack.c.bf16 %v398_v11, %v395_v10 }
 0x135   :  { %482 = vmatmul.mubr.f32.vlgmr.msra.gmra.mrb[0].mxu0 %v253_v16  ;;  %624 = vmatmul.mubr.f32.vlgmr.msra.gmra.mrb[4].mxu1 %v253_v16  ;;  %v397_v16 = vld [vmem:[#allocation7 + $0x468] sm:$0xff] }
 0x136   :  { %907 = vmatpush1.bf16.msra.mxu0 %v906_v13  ;;  %970 = vmatpush3.bf16.msra.mxu1 %v969_v14  ;;  %v987_v13 = vpack.c.bf16 %v393_v9, %v390_v8  ;;  %v394_v14 = vld [vmem:[#allocation7 + $0x450] sm:$0xff] }
 0x137   :  { %909 = vmatprep.subr.bf16.mxu0 %v908_v17  ;;  %971 = vmatprep.subr.bf16.mxu1 %v1117_v30  ;;  %v396_v17 = vld [vmem:[#allocation7 + $0x460] sm:$0xff]  ;;  %v934_v19 = vpack.c.bf16 %v397_v16, %v394_v14 }
 0x138   :  { %552 = vmatprep.mubr.f32.mxu0 %v1116_v0  ;;  %823 = vmatprep.mubr.msk.f32.mxu1 %vm1118_vm1, %v1116_v0  ;;  %v1014_v0 = vpop.eup %1013  ;;  %v990_v20 = vpack.c.bf16 %v399_v18, %v396_v17 }
 0x139   :  { %v246_v54 = vadd.f32 1.0, %v1014_v0 }
 0x13a   :  { %911 = vmatpush1.bf16.msra.mxu0 %v910_v23  ;;  %973 = vmatpush3.bf16.msra.mxu1 %v972_v24 }
 0x13b   :  { %913 = vmatprep.subr.bf16.mxu0 %v912_v26  ;;  %974 = vmatprep.subr.bf16.mxu1 %v1117_v30  ;;  %1015 = vrcp.f32 %v246_v54  ;;  %v400_v26 = vld [vmem:[%s1253_s4] sm:$0x7]  ;;  %s1083_s4 = scalar_lea.vmem %s709_s7, 384 }
 0x13c   :  { %v413_v27 = vrot.slane %v400_v26, %v85_v63  ;;  %v409_v28 = vrot.slane %v400_v26, %v81_v48  ;;  %p1084_p10 = scmp.ne.s32.totalorder %s709_s7, %s1083_s4  ;;  %p1089_p12 = scmp.lt.s32.totalorder %s1083_s4, %s1083_s4 }
 0x13e   :  { %915 = vmatpush1.bf16.msra.mxu0 %v914_v33  ;;  %976 = vmatpush3.bf16.msra.mxu1 %v975_v34  ;;  %p1090_p13 = por %p1089_p12, %p1088_p11 }
 0x13f   :  { %917 = vmatprep.subr.bf16.mxu0 %v916_v36  ;;  %977 = vmatprep.subr.bf16.mxu1 %v1117_v30 }
 0x140   :  { %p1091_p0 = pnand %p1090_p13, %p1084_p10 }
 0x142   :  { %919 = vmatpush1.bf16.msra.mxu0 %v918_v42  ;;  %979 = vmatpush3.bf16.msra.mxu1 %v978_v43 }
 0x143   :  { %921 = vmatprep.subr.bf16.mxu0 %v920_v47  ;;  %980 = vmatprep.subr.bf16.mxu1 %v1117_v30 }
 0x145   :  { %v1016_v21 = vpop.eup %1015 }
 0x146   :  { %923 = vmatpush1.bf16.msra.mxu0 %v922_v55  ;;  %982 = vmatpush3.bf16.msra.mxu1 %v981_v56  ;;  %v255_v22 = vmul.f32 %v1016_v21, %v1214_v2 }
 0x147   :  { %925 = vmatprep.subr.bf16.mxu0 %v924_v58  ;;  %983 = vmatprep.subr.bf16.mxu1 %v1117_v30 }
 0x14a   :  { %927 = vmatpush1.bf16.msra.mxu0 %v926_v3  ;;  %985 = vmatpush3.bf16.msra.mxu1 %v984_v4 }
 0x14b   :  { %929 = vmatprep.subr.bf16.mxu0 %v928_v6  ;;  %986 = vmatprep.subr.bf16.mxu1 %v1117_v30 }
 0x14e   :  { %931 = vmatpush1.bf16.msra.mxu0 %v930_v12  ;;  %988 = vmatpush3.bf16.msra.mxu1 %v987_v13 }
 0x14f   :  { %933 = vmatprep.subr.bf16.mxu0 %v932_v15  ;;  %989 = vmatprep.subr.bf16.mxu1 %v1117_v30  ;;  %v405_v30 = vrot.slane %v400_v26, %v77_v46 }
 0x152   :  { %935 = vmatpush1.bf16.msra.mxu0 %v934_v19  ;;  %991 = vmatpush3.bf16.msra.mxu1 %v990_v20 }
 0x155   :  { %553 = vmatmul.mubr.f32.vlgmr.msra.gmra.mrb[0].mxu0 %v255_v22  ;;  %824 = vmatmul.mubr.f32.vlgmr.msra.gmra.mrb[6].mxu1 %v255_v22 }
 0x208   :  { %v760_v23 = vpop.f32.mrb[4].mxu1 }
 0x209   :  { %v761_v24 = vpop.f32.mrb[5].mxu1 }
 0x20a   :  { %v762_v25 = vadd.f32 %v761_v24, %v760_v23 }
 0x20c   :  { %v626_v29 = vadd.f32 %v762_v25, %v413_v27 }
 0x228   :  { %v554_v2 = vpop.f32.mrb[0].mxu0  ;;  %v695_v31 = vpop.f32.mrb[6].mxu1 }
 0x229   :  { %v992_v32 = vadd.f32 %v554_v2, %v405_v30  ;;  %v696_v33 = vadd.f32 %v695_v31, %v626_v29  ;;  %v556_v34 = vpop.f32.mrb[1].mxu0  ;;  %v825_v35 = vpop.f32.mrb[7].mxu1 }
 0x22a   :  { %v993_v36 = vadd.f32 %v556_v34, %v409_v28 }
 0x22b   :  { %699 = vst [vmem:[#allocation8] sm:$0xff] %v992_v32  ;;  %701 = vst [vmem:[#allocation8 + $0x10] sm:$0xff] %v696_v33 }
 0x22c   :  { %700 = vst [vmem:[#allocation8 + $0x8] sm:$0xff] %v993_v36 }
 0x22d   :  { %1094 = shalt.err (!%p1091_p0)
}
 0x22e   :  { %s1095_s10 = scalar_lea.hbm %s1254_s5, 384 }
 0x22f   :  { %p1096_p1 = scmp.ne.s32.totalorder %s1254_s5, %s1095_s10  ;;  %p1099_p2 = scmp.lt.u32.totalorder %s1095_s10, %s1254_s5 }
 0x231   :  { %p1101_p3 = pnand %p1099_p2, %p1096_p1 }
 0x233   :  { %1104 = shalt.err (!%p1101_p3)
}
 0x234   :  { %711 = dma.vmem_to_hbm [thread:$0]  %s709_s7, 384, %s1254_s5, [#allocation4]  }
 0x235   :  { %1109 = dma.done.wait [#allocation4], 384  }
 0x236   :  { %1110 = vsyncadd [#allocation4], 4294966912 }
 0x237   :  { %715 = vsyncpa [#allocation3], 1 }
 0x238   :  { %716 = vsyncpa [#allocation6], 1 }
 0x239   :  { %717 = vsyncpa [#allocation4], 1 }

</bundles_post_ra>
